<compile_context>
chip_gen: v7x
topology: tpu7x:2x2x1
jax: 0.10.0
libtpu: 0.0.40
codegen_flags: <defaults>
</compile_context>

<pallas_src>
import math

import jax
import jax.numpy as jnp
from jax.experimental import pallas as pl
from jax.experimental.pallas import tpu as pltpu


def _round_up(a, m):
    return ((a + m - 1) // m) * m


def _vmem_capacity_bytes():
    try:
        return int(pltpu.get_tpu_info().vmem_capacity_bytes)
    except Exception:
        return 64 << 20  # v7x-sized (smallest current part); safe everywhere


# ---------------------------------------------------------------------------
# Fused kernel: 1x1 conv + depth-to-space, one block of k image rows per step.
#
# Index math (verified against the literal PyTorch chain in __main__):
#   out[n, b, h, a0*s*W + w*s + a1] = y[n, a0*s*nc + a1*nc + b, h, w]
# and the module's final (N, nc, W*s, H*s) is the row-major reinterpretation of
# that (N, nc, H, s*s*W) buffer.
# ---------------------------------------------------------------------------

def _make_fused_kernel(s, nc, k, W):
    sW = s * W

    def kernel(w_ref, x_ref, o_ref, y2_ref, y3_ref):
        # 1x1 conv on the MXU: (Cout, Cin) @ (Cin, k*W) -> (Cout, k*W), f32 acc.
        y2_ref[...] = jnp.dot(w_ref[...], x_ref[...],
                              preferred_element_type=jnp.float32)
        # Split the lane axis (row-major h*W + w) into a sublane row axis:
        #   y3[c, h, w] = y2[c, h*W + w]
        for h in range(k):
            y3_ref[:, h, :] = y2_ref[:, h * W:(h + 1) * W]
        # Depth-to-space, written lane-dense into the output block via stride-s
        # lane stores (the XLU/VPU work hides under the HBM-bound DMA).
        for a0 in range(s):
            for a1 in range(s):
                row0 = (a0 * s + a1) * nc
                piece = y3_ref[row0:row0 + nc, :, :]            # (nc, k, W)
                o_ref[:, :, pl.ds(a0 * sW + a1, W, stride=s)] = (
                    piece.astype(o_ref.dtype))

    return kernel


def _fused_vmem_bytes(Cin, Cout, nc, k, W, s, isize, osize):
    """Padded VMEM working set: double-buffered x/w/out blocks + f32 scratch."""
    t = k * W
    x_buf = 2 * _round_up(Cin, 8) * _round_up(t, 128) * isize
    w_buf = 2 * _round_up(Cout, 8) * _round_up(Cin, 128) * isize
    o_buf = 2 * nc * _round_up(k, 8) * _round_up(s * s * W, 128) * osize
    y2 = _round_up(Cout, 8) * _round_up(t, 128) * 4
    y3 = _round_up(Cout, 8) * _round_up(k, 8) * _round_up(W, 128) * 4
    return x_buf + w_buf + o_buf + y2 + y3


def _select_rows_per_step(N, Cin, Cout, nc, H, W, s, isize, osize, budget):
    """Rows of the image handled per grid step (None -> use unfused path).

    Legal choices: k == H (block equals the full dim) or k % 8 == 0 with
    (k * W) % 128 == 0, so the x / out blocks satisfy the (8, 128) rule.
    """

    def fits(k):
        return _fused_vmem_bytes(Cin, Cout, nc, k, W, s, isize, osize) <= budget

    g = math.gcd(W, 128)
    b = 128 // g
    ku = 8 * b // math.gcd(8, b)          # lcm(8, 128 / gcd(W, 128))

    # Small image with several images in the batch: one whole image per step.
    if H <= 64 and N >= 2 and fits(H):
        return H
    # Aligned sub-image row blocks (MB-scale per step, bounded unroll).
    if H >= ku:
        cap = min(H, max(64, ku))
        if N == 1:  # leave >= 2 row blocks so both v7x TensorCores get work
            cap = min(cap, max(ku, (((H + 1) // 2) // ku) * ku))
        k = (cap // ku) * ku
        while k >= ku:
            if fits(k):
                return k
            k -= ku
    # Small image that missed the first branch (e.g. N == 1): whole image.
    if H <= 128 and fits(H):
        return H
    return None


def _dupsampling_fused(x, w_oc, s, nc, k):
    N, Cin, H, W = x.shape
    Cout = w_oc.shape[0]
    HW = H * W
    s2W = s * s * W
    t = k * W
    isize = x.dtype.itemsize

    x3 = x.reshape(N, Cin, HW)                               # free (row-major)
    grid = (N, (H + k - 1) // k)                             # ragged tail OK

    need = _fused_vmem_bytes(Cin, Cout, nc, k, W, s, isize, isize)
    vmem_limit = int(max(need + (4 << 20), 16 << 20))

    cost = pl.CostEstimate(
        flops=2 * N * HW * Cin * Cout,
        transcendentals=0,
        bytes_accessed=isize * (N * Cin * HW + Cout * Cin + N * Cout * HW),
    )

    # NOTE: the constant-index weight spec could use pipeline_mode=pl.Buffered(1)
    # to skip double-buffering for very large Cin*Cout; unnecessary here.
    out = pl.pallas_call(
        _make_fused_kernel(s, nc, k, W),
        out_shape=jax.ShapeDtypeStruct((N, nc, H, s2W), x.dtype),
        grid_spec=pltpu.PrefetchScalarGridSpec(
            num_scalar_prefetch=0,
            grid=grid,
            in_specs=[
                pl.BlockSpec((Cout, Cin), lambda n, j: (0, 0)),        # weight
                pl.BlockSpec((None, Cin, t), lambda n, j: (n, 0, j)),  # x rows
            ],
            out_specs=pl.BlockSpec((None, nc, k, s2W),
                                   lambda n, j: (n, 0, j, 0)),
            scratch_shapes=[
                pltpu.VMEM((Cout, t), jnp.float32),      # conv result
                pltpu.VMEM((Cout, k, W), jnp.float32),   # row-split conv result
            ],
        ),
        compiler_params=pltpu.CompilerParams(
            dimension_semantics=("parallel", "parallel"),
            vmem_limit_bytes=vmem_limit,
        ),
        cost_estimate=cost,
    )(w_oc, x3)

    # Per (n, class) this buffer is exactly the module's flat order
    # h*(s*s*W) + a0*(s*W) + w*s + a1, so this reshape is free.
    return out.reshape(N, nc, W * s, H * s)


# ---------------------------------------------------------------------------
# Unfused fallback: lane-dense 1x1 conv kernel + collapsed XLA transpose.
# ---------------------------------------------------------------------------

def _conv1x1_kernel(w_ref, x_ref, o_ref):
    o_ref[...] = jnp.dot(w_ref[...], x_ref[...],
                         preferred_element_type=jnp.float32).astype(o_ref.dtype)


def _conv1x1_unfused(x3, w_oc, budget):
    N, Cin, HW = x3.shape
    Cout = w_oc.shape[0]
    isize = x3.dtype.itemsize

    # Lane tile: MB-scale per step, 128-aligned; full extent for tiny images.
    per_lane = 2 * (_round_up(Cin, 8) + _round_up(Cout, 8)) * isize
    t = max(512, min(budget // max(per_lane, 1), 32768))
    t = (t // 128) * 128
    if HW <= t:
        t = HW                        # full-dim block: always a legal shape
    grid = (N, (HW + t - 1) // t)     # ragged tail OK, no pad / no slice

    need = (2 * (_round_up(Cin, 8) + _round_up(Cout, 8)) * _round_up(t, 128)
            * isize
            + 2 * _round_up(Cout, 8) * _round_up(Cin, 128) * isize)
    vmem_limit = int(max(need + (4 << 20), 16 << 20))

    cost = pl.CostEstimate(
        flops=2 * N * HW * Cin * Cout,
        transcendentals=0,
        bytes_accessed=isize * (N * Cin * HW + Cout * Cin + N * Cout * HW),
    )

    return pl.pallas_call(
        _conv1x1_kernel,
        out_shape=jax.ShapeDtypeStruct((N, Cout, HW), x3.dtype),
        grid_spec=pltpu.PrefetchScalarGridSpec(
            num_scalar_prefetch=0,
            grid=grid,
            in_specs=[
                pl.BlockSpec((Cout, Cin), lambda n, j: (0, 0)),
                pl.BlockSpec((None, Cin, t), lambda n, j: (n, 0, j)),
            ],
            out_specs=pl.BlockSpec((None, Cout, t), lambda n, j: (n, 0, j)),
        ),
        compiler_params=pltpu.CompilerParams(
            dimension_semantics=("parallel", "parallel"),
            vmem_limit_bytes=vmem_limit,
        ),
        cost_estimate=cost,
    )(w_oc, x3)


def _dupsampling_unfused(x, w_oc, s, nc):
    N, Cin, H, W = x.shape
    Cout = w_oc.shape[0]
    budget = int(0.7 * _vmem_capacity_bytes())
    y = _conv1x1_unfused(x.reshape(N, Cin, H * W), w_oc, budget)
    y = y.reshape(N, Cout, H, W)
    # Collapsed equivalent of the module's permute/contiguous().view chain.
    z = y.reshape(N, s, s, nc, H, W)                  # free
    zt = jnp.transpose(z, (0, 3, 4, 1, 5, 2))         # (N, nc, H, s, W, s)
    return zt.reshape(N, nc, W * s, H * s)            # free (row-major)


# ---------------------------------------------------------------------------
# Public forward
# ---------------------------------------------------------------------------

def dupsampling_forward(x, conv_w_weight, scale):
    """Exact re-implementation of DUpsampling.forward.

    x: (N, Cin, H, W); conv_w_weight: (Cout, Cin, 1, 1), Cout = num_class*scale^2.
    Returns (N, num_class, W*scale, H*scale), matching the PyTorch module.
    """
    # TODO(synk): conv_p is defined in the module's __init__ but never used in
    # forward(); omitted.  The module's print() calls are also omitted.
    N, Cin, H, W = x.shape
    Cout = conv_w_weight.shape[0]
    s = int(scale)
    assert Cout % (s * s) == 0
    nc = Cout // (s * s)
    w_oc = conv_w_weight.reshape(Cout, Cin)
    isize = x.dtype.itemsize

    budget = int(0.7 * _vmem_capacity_bytes())
    k = _select_rows_per_step(N, Cin, Cout, nc, H, W, s, isize, isize, budget)
    if k is not None:
        try:
            out = _dupsampling_fused(x, w_oc, s, nc, k)
            jax.block_until_ready(out)
            return out
        except Exception:
            # Safety net: if the fused depth-to-space kernel fails to lower on
            # this backend, fall back to the unfused (conv + transpose) path.
            pass
    return _dupsampling_unfused(x, w_oc, s, nc)


def _dupsampling_reference(x, conv_w_weight, scale):
    """Pure-JAX literal replication of the PyTorch forward (for verification)."""
    N, Cin, H, W = x.shape
    Cout = conv_w_weight.shape[0]
    w = conv_w_weight[:, :, 0, 0]                                 # (Cout, Cin)
    y = jnp.sum(x[:, None, :, :, :] * w[None, :, :, None, None], axis=2)
    xp = jnp.transpose(y, (0, 3, 2, 1))                           # (N, W, H, C)
    xp = xp.reshape(N, W, H * scale, Cout // scale)
    xp = jnp.transpose(xp, (0, 2, 1, 3))
    xp = xp.reshape(N, W * scale, H * scale, Cout // (scale * scale))
    return jnp.transpose(xp, (0, 3, 1, 2))                        # (N, nc, W*s, H*s)


if __name__ == "__main__":
    key = jax.random.PRNGKey(0)

    def run_case(case_key, N, Cin, H, W, scale, nc, also_unfused=False):
        k_x, k_w = jax.random.split(case_key)
        Cout = nc * scale * scale
        x = jax.random.normal(k_x, (N, Cin, H, W), dtype=jnp.float32)
        w4 = jax.random.normal(k_w, (Cout, Cin, 1, 1), dtype=jnp.float32) * 0.1
        ref = _dupsampling_reference(x, w4, scale)

        out = dupsampling_forward(x, w4, scale)
        jax.block_until_ready(out)
        assert out.shape == (N, nc, W * scale, H * scale), out.shape
        err = float(jnp.max(jnp.abs(out - ref)))
        assert err < 5e-4, f"mismatch vs reference: max abs err {err}"

        if also_unfused:  # exercise the fallback path explicitly as well
            out2 = _dupsampling_unfused(x, w4.reshape(Cout, Cin), scale, nc)
            jax.block_until_ready(out2)
            err2 = float(jnp.max(jnp.abs(out2 - ref)))
            assert err2 < 5e-4, f"unfused mismatch: max abs err {err2}"

    k1, k2, k3 = jax.random.split(key, 3)
    # Case 1: non-square H != W exercises the module's exact flat
    # reinterpretation (fused path, whole image per grid step).
    run_case(k1, N=2, Cin=8, H=16, W=8, scale=2, nc=4, also_unfused=True)
    # Case 2: H*W not a multiple of 128, tiny image (fused whole-image path,
    # lane-padded blocks, no pad/slice copies).
    run_case(k2, N=1, Cin=8, H=6, W=10, scale=2, nc=4)
    # Case 3: N == 1 with several row blocks and a ragged final block
    # (fused tiled-row path).
    run_case(k3, N=1, Cin=16, H=40, W=16, scale=2, nc=5)

    print("KERNEL_OK")
</pallas_src>

<mosaic_0001>
module attributes {stable_mosaic.version = 11 : i64} {
  func.func @kernel(%arg0: i32, %arg1: i32, %arg2: memref<16x8xf32, #tpu.memory_space<vmem>>, %arg3: memref<1x8x128xf32, #tpu.memory_space<vmem>>, %arg4: memref<1x4x16x32xf32, #tpu.memory_space<vmem>>, %arg5: memref<16x128xf32, #tpu.memory_space<vmem>>, %arg6: memref<16x16x8xf32, #tpu.memory_space<vmem>>) attributes {dimension_semantics = [#tpu.dimension_semantics<parallel>, #tpu.dimension_semantics<parallel>], iteration_bounds = array<i64: 2, 1>, scalar_prefetch = 0 : i64, scratch_operands = 2 : i64, tpu.core_type = #tpu.core_type<tc>, window_params = [{pipeline_mode = #tpu.pipeline_mode<synchronous>, transform_indices = @transform_0, window_bounds = array<i64: 16, 8>}, {transform_indices = @transform_1, window_bounds = array<i64: 1, 8, 128>}, {transform_indices = @transform_2, window_bounds = array<i64: 1, 4, 16, 32>}]} {
    %c0 = arith.constant 0 : index
    %c0_0 = arith.constant 0 : index
    %0 = vector.load %arg2[%c0, %c0_0] : memref<16x8xf32, #tpu.memory_space<vmem>>, vector<16x8xf32>
    %c0_1 = arith.constant 0 : index
    %c0_2 = arith.constant 0 : index
    %c0_3 = arith.constant 0 : index
    %1 = vector.load %arg3[%c0_1, %c0_2, %c0_3] : memref<1x8x128xf32, #tpu.memory_space<vmem>>, vector<1x8x128xf32>
    %2 = vector.shape_cast %1 : vector<1x8x128xf32> to vector<8x128xf32>
    %cst = arith.constant dense<0.000000e+00> : vector<16x128xf32>
    %3 = tpu.matmul %0, %2, %cst {dimension_numbers = #tpu.dot_dimension_numbers<[1], [0], [0], [1], [0, 0, 1, 1], [], []>} : vector<16x8xf32>, vector<8x128xf32>, vector<16x128xf32> -> vector<16x128xf32>
    %c0_4 = arith.constant 0 : index
    %c0_5 = arith.constant 0 : index
    %4 = vector.load %arg5[%c0_4, %c0_5] : memref<16x128xf32, #tpu.memory_space<vmem>>, vector<16x128xf32>
    tpu.vector_store %arg5[%c0_4, %c0_5], %3 {strides = array<i32>} : memref<16x128xf32, #tpu.memory_space<vmem>>, vector<16x128xf32>,
    %c0_6 = arith.constant 0 : index
    %c0_7 = arith.constant 0 : index
    %5 = vector.load %arg5[%c0_6, %c0_7] : memref<16x128xf32, #tpu.memory_space<vmem>>, vector<16x8xf32>
    %c0_8 = arith.constant 0 : index
    %c0_9 = arith.constant 0 : index
    %c0_10 = arith.constant 0 : index
    %6 = vector.load %arg6[%c0_8, %c0_9, %c0_10] : memref<16x16x8xf32, #tpu.memory_space<vmem>>, vector<16x1x8xf32>
    %7 = vector.shape_cast %6 : vector<16x1x8xf32> to vector<16x8xf32>
    %8 = vector.shape_cast %5 : vector<16x8xf32> to vector<16x1x8xf32>
    tpu.vector_store %arg6[%c0_8, %c0_9, %c0_10], %8 {strides = array<i32>} : memref<16x16x8xf32, #tpu.memory_space<vmem>>, vector<16x1x8xf32>,
    %c0_11 = arith.constant 0 : index
    %c8 = arith.constant 8 : index
    %9 = vector.load %arg5[%c0_11, %c8] : memref<16x128xf32, #tpu.memory_space<vmem>>, vector<16x8xf32>
    %c0_12 = arith.constant 0 : index
    %c1 = arith.constant 1 : index
    %c0_13 = arith.constant 0 : index
    %10 = vector.load %arg6[%c0_12, %c1, %c0_13] : memref<16x16x8xf32, #tpu.memory_space<vmem>>, vector<16x1x8xf32>
    %11 = vector.shape_cast %10 : vector<16x1x8xf32> to vector<16x8xf32>
    %12 = vector.shape_cast %9 : vector<16x8xf32> to vector<16x1x8xf32>
    tpu.vector_store %arg6[%c0_12, %c1, %c0_13], %12 {strides = array<i32>} : memref<16x16x8xf32, #tpu.memory_space<vmem>>, vector<16x1x8xf32>,
    %c0_14 = arith.constant 0 : index
    %c16 = arith.constant 16 : index
    %13 = vector.load %arg5[%c0_14, %c16] : memref<16x128xf32, #tpu.memory_space<vmem>>, vector<16x8xf32>
    %c0_15 = arith.constant 0 : index
    %c2 = arith.constant 2 : index
    %c0_16 = arith.constant 0 : index
    %14 = vector.load %arg6[%c0_15, %c2, %c0_16] : memref<16x16x8xf32, #tpu.memory_space<vmem>>, vector<16x1x8xf32>
    %15 = vector.shape_cast %14 : vector<16x1x8xf32> to vector<16x8xf32>
    %16 = vector.shape_cast %13 : vector<16x8xf32> to vector<16x1x8xf32>
    tpu.vector_store %arg6[%c0_15, %c2, %c0_16], %16 {strides = array<i32>} : memref<16x16x8xf32, #tpu.memory_space<vmem>>, vector<16x1x8xf32>,
    %c0_17 = arith.constant 0 : index
    %c24 = arith.constant 24 : index
    %17 = vector.load %arg5[%c0_17, %c24] : memref<16x128xf32, #tpu.memory_space<vmem>>, vector<16x8xf32>
    %c0_18 = arith.constant 0 : index
    %c3 = arith.constant 3 : index
    %c0_19 = arith.constant 0 : index
    %18 = vector.load %arg6[%c0_18, %c3, %c0_19] : memref<16x16x8xf32, #tpu.memory_space<vmem>>, vector<16x1x8xf32>
    %19 = vector.shape_cast %18 : vector<16x1x8xf32> to vector<16x8xf32>
    %20 = vector.shape_cast %17 : vector<16x8xf32> to vector<16x1x8xf32>
    tpu.vector_store %arg6[%c0_18, %c3, %c0_19], %20 {strides = array<i32>} : memref<16x16x8xf32, #tpu.memory_space<vmem>>, vector<16x1x8xf32>,
    %c0_20 = arith.constant 0 : index
    %c32 = arith.constant 32 : index
    %21 = vector.load %arg5[%c0_20, %c32] : memref<16x128xf32, #tpu.memory_space<vmem>>, vector<16x8xf32>
    %c0_21 = arith.constant 0 : index
    %c4 = arith.constant 4 : index
    %c0_22 = arith.constant 0 : index
    %22 = vector.load %arg6[%c0_21, %c4, %c0_22] : memref<16x16x8xf32, #tpu.memory_space<vmem>>, vector<16x1x8xf32>
    %23 = vector.shape_cast %22 : vector<16x1x8xf32> to vector<16x8xf32>
    %24 = vector.shape_cast %21 : vector<16x8xf32> to vector<16x1x8xf32>
    tpu.vector_store %arg6[%c0_21, %c4, %c0_22], %24 {strides = array<i32>} : memref<16x16x8xf32, #tpu.memory_space<vmem>>, vector<16x1x8xf32>,
    %c0_23 = arith.constant 0 : index
    %c40 = arith.constant 40 : index
    %25 = vector.load %arg5[%c0_23, %c40] : memref<16x128xf32, #tpu.memory_space<vmem>>, vector<16x8xf32>
    %c0_24 = arith.constant 0 : index
    %c5 = arith.constant 5 : index
    %c0_25 = arith.constant 0 : index
    %26 = vector.load %arg6[%c0_24, %c5, %c0_25] : memref<16x16x8xf32, #tpu.memory_space<vmem>>, vector<16x1x8xf32>
    %27 = vector.shape_cast %26 : vector<16x1x8xf32> to vector<16x8xf32>
    %28 = vector.shape_cast %25 : vector<16x8xf32> to vector<16x1x8xf32>
    tpu.vector_store %arg6[%c0_24, %c5, %c0_25], %28 {strides = array<i32>} : memref<16x16x8xf32, #tpu.memory_space<vmem>>, vector<16x1x8xf32>,
    %c0_26 = arith.constant 0 : index
    %c48 = arith.constant 48 : index
    %29 = vector.load %arg5[%c0_26, %c48] : memref<16x128xf32, #tpu.memory_space<vmem>>, vector<16x8xf32>
    %c0_27 = arith.constant 0 : index
    %c6 = arith.constant 6 : index
    %c0_28 = arith.constant 0 : index
    %30 = vector.load %arg6[%c0_27, %c6, %c0_28] : memref<16x16x8xf32, #tpu.memory_space<vmem>>, vector<16x1x8xf32>
    %31 = vector.shape_cast %30 : vector<16x1x8xf32> to vector<16x8xf32>
    %32 = vector.shape_cast %29 : vector<16x8xf32> to vector<16x1x8xf32>
    tpu.vector_store %arg6[%c0_27, %c6, %c0_28], %32 {strides = array<i32>} : memref<16x16x8xf32, #tpu.memory_space<vmem>>, vector<16x1x8xf32>,
    %c0_29 = arith.constant 0 : index
    %c56 = arith.constant 56 : index
    %33 = vector.load %arg5[%c0_29, %c56] : memref<16x128xf32, #tpu.memory_space<vmem>>, vector<16x8xf32>
    %c0_30 = arith.constant 0 : index
    %c7 = arith.constant 7 : index
    %c0_31 = arith.constant 0 : index
    %34 = vector.load %arg6[%c0_30, %c7, %c0_31] : memref<16x16x8xf32, #tpu.memory_space<vmem>>, vector<16x1x8xf32>
    %35 = vector.shape_cast %34 : vector<16x1x8xf32> to vector<16x8xf32>
    %36 = vector.shape_cast %33 : vector<16x8xf32> to vector<16x1x8xf32>
    tpu.vector_store %arg6[%c0_30, %c7, %c0_31], %36 {strides = array<i32>} : memref<16x16x8xf32, #tpu.memory_space<vmem>>, vector<16x1x8xf32>,
    %c0_32 = arith.constant 0 : index
    %c64 = arith.constant 64 : index
    %37 = vector.load %arg5[%c0_32, %c64] : memref<16x128xf32, #tpu.memory_space<vmem>>, vector<16x8xf32>
    %c0_33 = arith.constant 0 : index
    %c8_34 = arith.constant 8 : index
    %c0_35 = arith.constant 0 : index
    %38 = vector.load %arg6[%c0_33, %c8_34, %c0_35] : memref<16x16x8xf32, #tpu.memory_space<vmem>>, vector<16x1x8xf32>
    %39 = vector.shape_cast %38 : vector<16x1x8xf32> to vector<16x8xf32>
    %40 = vector.shape_cast %37 : vector<16x8xf32> to vector<16x1x8xf32>
    tpu.vector_store %arg6[%c0_33, %c8_34, %c0_35], %40 {strides = array<i32>} : memref<16x16x8xf32, #tpu.memory_space<vmem>>, vector<16x1x8xf32>,
    %c0_36 = arith.constant 0 : index
    %c72 = arith.constant 72 : index
    %41 = vector.load %arg5[%c0_36, %c72] : memref<16x128xf32, #tpu.memory_space<vmem>>, vector<16x8xf32>
    %c0_37 = arith.constant 0 : index
    %c9 = arith.constant 9 : index
    %c0_38 = arith.constant 0 : index
    %42 = vector.load %arg6[%c0_37, %c9, %c0_38] : memref<16x16x8xf32, #tpu.memory_space<vmem>>, vector<16x1x8xf32>
    %43 = vector.shape_cast %42 : vector<16x1x8xf32> to vector<16x8xf32>
    %44 = vector.shape_cast %41 : vector<16x8xf32> to vector<16x1x8xf32>
    tpu.vector_store %arg6[%c0_37, %c9, %c0_38], %44 {strides = array<i32>} : memref<16x16x8xf32, #tpu.memory_space<vmem>>, vector<16x1x8xf32>,
    %c0_39 = arith.constant 0 : index
    %c80 = arith.constant 80 : index
    %45 = vector.load %arg5[%c0_39, %c80] : memref<16x128xf32, #tpu.memory_space<vmem>>, vector<16x8xf32>
    %c0_40 = arith.constant 0 : index
    %c10 = arith.constant 10 : index
    %c0_41 = arith.constant 0 : index
    %46 = vector.load %arg6[%c0_40, %c10, %c0_41] : memref<16x16x8xf32, #tpu.memory_space<vmem>>, vector<16x1x8xf32>
    %47 = vector.shape_cast %46 : vector<16x1x8xf32> to vector<16x8xf32>
    %48 = vector.shape_cast %45 : vector<16x8xf32> to vector<16x1x8xf32>
    tpu.vector_store %arg6[%c0_40, %c10, %c0_41], %48 {strides = array<i32>} : memref<16x16x8xf32, #tpu.memory_space<vmem>>, vector<16x1x8xf32>,
    %c0_42 = arith.constant 0 : index
    %c88 = arith.constant 88 : index
    %49 = vector.load %arg5[%c0_42, %c88] : memref<16x128xf32, #tpu.memory_space<vmem>>, vector<16x8xf32>
    %c0_43 = arith.constant 0 : index
    %c11 = arith.constant 11 : index
    %c0_44 = arith.constant 0 : index
    %50 = vector.load %arg6[%c0_43, %c11, %c0_44] : memref<16x16x8xf32, #tpu.memory_space<vmem>>, vector<16x1x8xf32>
    %51 = vector.shape_cast %50 : vector<16x1x8xf32> to vector<16x8xf32>
    %52 = vector.shape_cast %49 : vector<16x8xf32> to vector<16x1x8xf32>
    tpu.vector_store %arg6[%c0_43, %c11, %c0_44], %52 {strides = array<i32>} : memref<16x16x8xf32, #tpu.memory_space<vmem>>, vector<16x1x8xf32>,
    %c0_45 = arith.constant 0 : index
    %c96 = arith.constant 96 : index
    %53 = vector.load %arg5[%c0_45, %c96] : memref<16x128xf32, #tpu.memory_space<vmem>>, vector<16x8xf32>
    %c0_46 = arith.constant 0 : index
    %c12 = arith.constant 12 : index
    %c0_47 = arith.constant 0 : index
    %54 = vector.load %arg6[%c0_46, %c12, %c0_47] : memref<16x16x8xf32, #tpu.memory_space<vmem>>, vector<16x1x8xf32>
    %55 = vector.shape_cast %54 : vector<16x1x8xf32> to vector<16x8xf32>
    %56 = vector.shape_cast %53 : vector<16x8xf32> to vector<16x1x8xf32>
    tpu.vector_store %arg6[%c0_46, %c12, %c0_47], %56 {strides = array<i32>} : memref<16x16x8xf32, #tpu.memory_space<vmem>>, vector<16x1x8xf32>,
    %c0_48 = arith.constant 0 : index
    %c104 = arith.constant 104 : index
    %57 = vector.load %arg5[%c0_48, %c104] : memref<16x128xf32, #tpu.memory_space<vmem>>, vector<16x8xf32>
    %c0_49 = arith.constant 0 : index
    %c13 = arith.constant 13 : index
    %c0_50 = arith.constant 0 : index
    %58 = vector.load %arg6[%c0_49, %c13, %c0_50] : memref<16x16x8xf32, #tpu.memory_space<vmem>>, vector<16x1x8xf32>
    %59 = vector.shape_cast %58 : vector<16x1x8xf32> to vector<16x8xf32>
    %60 = vector.shape_cast %57 : vector<16x8xf32> to vector<16x1x8xf32>
    tpu.vector_store %arg6[%c0_49, %c13, %c0_50], %60 {strides = array<i32>} : memref<16x16x8xf32, #tpu.memory_space<vmem>>, vector<16x1x8xf32>,
    %c0_51 = arith.constant 0 : index
    %c112 = arith.constant 112 : index
    %61 = vector.load %arg5[%c0_51, %c112] : memref<16x128xf32, #tpu.memory_space<vmem>>, vector<16x8xf32>
    %c0_52 = arith.constant 0 : index
    %c14 = arith.constant 14 : index
    %c0_53 = arith.constant 0 : index
    %62 = vector.load %arg6[%c0_52, %c14, %c0_53] : memref<16x16x8xf32, #tpu.memory_space<vmem>>, vector<16x1x8xf32>
    %63 = vector.shape_cast %62 : vector<16x1x8xf32> to vector<16x8xf32>
    %64 = vector.shape_cast %61 : vector<16x8xf32> to vector<16x1x8xf32>
    tpu.vector_store %arg6[%c0_52, %c14, %c0_53], %64 {strides = array<i32>} : memref<16x16x8xf32, #tpu.memory_space<vmem>>, vector<16x1x8xf32>,
    %c0_54 = arith.constant 0 : index
    %c120 = arith.constant 120 : index
    %65 = vector.load %arg5[%c0_54, %c120] : memref<16x128xf32, #tpu.memory_space<vmem>>, vector<16x8xf32>
    %c0_55 = arith.constant 0 : index
    %c15 = arith.constant 15 : index
    %c0_56 = arith.constant 0 : index
    %66 = vector.load %arg6[%c0_55, %c15, %c0_56] : memref<16x16x8xf32, #tpu.memory_space<vmem>>, vector<16x1x8xf32>
    %67 = vector.shape_cast %66 : vector<16x1x8xf32> to vector<16x8xf32>
    %68 = vector.shape_cast %65 : vector<16x8xf32> to vector<16x1x8xf32>
    tpu.vector_store %arg6[%c0_55, %c15, %c0_56], %68 {strides = array<i32>} : memref<16x16x8xf32, #tpu.memory_space<vmem>>, vector<16x1x8xf32>,
    %c0_57 = arith.constant 0 : index
    %c0_58 = arith.constant 0 : index
    %c0_59 = arith.constant 0 : index
    %69 = vector.load %arg6[%c0_57, %c0_58, %c0_59] : memref<16x16x8xf32, #tpu.memory_space<vmem>>, vector<4x16x8xf32>
    %c0_60 = arith.constant 0 : index
    %c0_61 = arith.constant 0 : index
    %c0_62 = arith.constant 0 : index
    %c0_63 = arith.constant 0 : index
    %70 = tpu.strided_load %arg4[%c0_60, %c0_61, %c0_62, %c0_63] {strides = array<i32: 1, 1, 1, 2>} : memref<1x4x16x32xf32, #tpu.memory_space<vmem>>, vector<1x4x16x8xf32>
    %71 = vector.shape_cast %70 : vector<1x4x16x8xf32> to vector<4x16x8xf32>
    %72 = vector.shape_cast %69 : vector<4x16x8xf32> to vector<1x4x16x8xf32>
    tpu.strided_store %arg4[%c0_60, %c0_61, %c0_62, %c0_63], %72 {strides = array<i32: 1, 1, 1, 2>} : memref<1x4x16x32xf32, #tpu.memory_space<vmem>>, vector<1x4x16x8xf32>
    %c4_64 = arith.constant 4 : index
    %c0_65 = arith.constant 0 : index
    %c0_66 = arith.constant 0 : index
    %73 = vector.load %arg6[%c4_64, %c0_65, %c0_66] : memref<16x16x8xf32, #tpu.memory_space<vmem>>, vector<4x16x8xf32>
    %c0_67 = arith.constant 0 : index
    %c0_68 = arith.constant 0 : index
    %c0_69 = arith.constant 0 : index
    %c1_70 = arith.constant 1 : index
    %74 = tpu.strided_load %arg4[%c0_67, %c0_68, %c0_69, %c1_70] {strides = array<i32: 1, 1, 1, 2>} : memref<1x4x16x32xf32, #tpu.memory_space<vmem>>, vector<1x4x16x8xf32>
    %75 = vector.shape_cast %74 : vector<1x4x16x8xf32> to vector<4x16x8xf32>
    %76 = vector.shape_cast %73 : vector<4x16x8xf32> to vector<1x4x16x8xf32>
    tpu.strided_store %arg4[%c0_67, %c0_68, %c0_69, %c1_70], %76 {strides = array<i32: 1, 1, 1, 2>} : memref<1x4x16x32xf32, #tpu.memory_space<vmem>>, vector<1x4x16x8xf32>
    %c8_71 = arith.constant 8 : index
    %c0_72 = arith.constant 0 : index
    %c0_73 = arith.constant 0 : index
    %77 = vector.load %arg6[%c8_71, %c0_72, %c0_73] : memref<16x16x8xf32, #tpu.memory_space<vmem>>, vector<4x16x8xf32>
    %c0_74 = arith.constant 0 : index
    %c0_75 = arith.constant 0 : index
    %c0_76 = arith.constant 0 : index
    %c16_77 = arith.constant 16 : index
    %78 = tpu.strided_load %arg4[%c0_74, %c0_75, %c0_76, %c16_77] {strides = array<i32: 1, 1, 1, 2>} : memref<1x4x16x32xf32, #tpu.memory_space<vmem>>, vector<1x4x16x8xf32>
    %79 = vector.shape_cast %78 : vector<1x4x16x8xf32> to vector<4x16x8xf32>
    %80 = vector.shape_cast %77 : vector<4x16x8xf32> to vector<1x4x16x8xf32>
    tpu.strided_store %arg4[%c0_74, %c0_75, %c0_76, %c16_77], %80 {strides = array<i32: 1, 1, 1, 2>} : memref<1x4x16x32xf32, #tpu.memory_space<vmem>>, vector<1x4x16x8xf32>
    %c12_78 = arith.constant 12 : index
    %c0_79 = arith.constant 0 : index
    %c0_80 = arith.constant 0 : index
    %81 = vector.load %arg6[%c12_78, %c0_79, %c0_80] : memref<16x16x8xf32, #tpu.memory_space<vmem>>, vector<4x16x8xf32>
    %c0_81 = arith.constant 0 : index
    %c0_82 = arith.constant 0 : index
    %c0_83 = arith.constant 0 : index
    %c17 = arith.constant 17 : index
    %82 = tpu.strided_load %arg4[%c0_81, %c0_82, %c0_83, %c17] {strides = array<i32: 1, 1, 1, 2>} : memref<1x4x16x32xf32, #tpu.memory_space<vmem>>, vector<1x4x16x8xf32>
    %83 = vector.shape_cast %82 : vector<1x4x16x8xf32> to vector<4x16x8xf32>
    %84 = vector.shape_cast %81 : vector<4x16x8xf32> to vector<1x4x16x8xf32>
    tpu.strided_store %arg4[%c0_81, %c0_82, %c0_83, %c17], %84 {strides = array<i32: 1, 1, 1, 2>} : memref<1x4x16x32xf32, #tpu.memory_space<vmem>>, vector<1x4x16x8xf32>
    return
  }
  func.func @transform_0(%arg0: i32, %arg1: i32) -> (i32, i32) {
    %c0_i32 = arith.constant 0 : i32
    %c0_i32_0 = arith.constant 0 : i32
    %c0_i32_1 = arith.constant 0 : i32
    return %c0_i32, %c0_i32_0 : i32, i32
  }
  func.func @transform_1(%arg0: i32, %arg1: i32) -> (i32, i32, i32) {
    %c0_i32 = arith.constant 0 : i32
    %c0_i32_0 = arith.constant 0 : i32
    return %arg0, %c0_i32, %arg1 : i32, i32, i32
  }
  func.func @transform_2(%arg0: i32, %arg1: i32) -> (i32, i32, i32, i32) {
    %c0_i32 = arith.constant 0 : i32
    %c0_i32_0 = arith.constant 0 : i32
    %c0_i32_1 = arith.constant 0 : i32
    return %arg0, %c0_i32, %arg1, %c0_i32_0 : i32, i32, i32, i32
  }
}

module attributes {stable_mosaic.version = 11 : i64} {
  func.func @_conv1x1_kernel(%arg0: i32, %arg1: i32, %arg2: memref<16x8xf32, #tpu.memory_space<vmem>>, %arg3: memref<1x8x128xf32, #tpu.memory_space<vmem>>, %arg4: memref<1x16x128xf32, #tpu.memory_space<vmem>>) attributes {dimension_semantics = [#tpu.dimension_semantics<parallel>, #tpu.dimension_semantics<parallel>], iteration_bounds = array<i64: 2, 1>, scalar_prefetch = 0 : i64, scratch_operands = 0 : i64, tpu.core_type = #tpu.core_type<tc>, window_params = [{pipeline_mode = #tpu.pipeline_mode<synchronous>, transform_indices = @transform_0, window_bounds = array<i64: 16, 8>}, {transform_indices = @transform_1, window_bounds = array<i64: 1, 8, 128>}, {transform_indices = @transform_2, window_bounds = array<i64: 1, 16, 128>}]} {
    %c0 = arith.constant 0 : index
    %c0_0 = arith.constant 0 : index
    %0 = vector.load %arg2[%c0, %c0_0] : memref<16x8xf32, #tpu.memory_space<vmem>>, vector<16x8xf32>
    %c0_1 = arith.constant 0 : index
    %c0_2 = arith.constant 0 : index
    %c0_3 = arith.constant 0 : index
    %1 = vector.load %arg3[%c0_1, %c0_2, %c0_3] : memref<1x8x128xf32, #tpu.memory_space<vmem>>, vector<1x8x128xf32>
    %2 = vector.shape_cast %1 : vector<1x8x128xf32> to vector<8x128xf32>
    %cst = arith.constant dense<0.000000e+00> : vector<16x128xf32>
    %3 = tpu.matmul %0, %2, %cst {dimension_numbers = #tpu.dot_dimension_numbers<[1], [0], [0], [1], [0, 0, 1, 1], [], []>} : vector<16x8xf32>, vector<8x128xf32>, vector<16x128xf32> -> vector<16x128xf32>
    %c0_4 = arith.constant 0 : index
    %c0_5 = arith.constant 0 : index
    %c0_6 = arith.constant 0 : index
    %4 = vector.load %arg4[%c0_4, %c0_5, %c0_6] : memref<1x16x128xf32, #tpu.memory_space<vmem>>, vector<1x16x128xf32>
    %5 = vector.shape_cast %4 : vector<1x16x128xf32> to vector<16x128xf32>
    %6 = vector.shape_cast %3 : vector<16x128xf32> to vector<1x16x128xf32>
    tpu.vector_store %arg4[%c0_4, %c0_5, %c0_6], %6 {strides = array<i32>} : memref<1x16x128xf32, #tpu.memory_space<vmem>>, vector<1x16x128xf32>,
    return
  }
  func.func @transform_0(%arg0: i32, %arg1: i32) -> (i32, i32) {
    %c0_i32 = arith.constant 0 : i32
    %c0_i32_0 = arith.constant 0 : i32
    %c0_i32_1 = arith.constant 0 : i32
    return %c0_i32, %c0_i32_0 : i32, i32
  }
  func.func @transform_1(%arg0: i32, %arg1: i32) -> (i32, i32, i32) {
    %c0_i32 = arith.constant 0 : i32
    %c0_i32_0 = arith.constant 0 : i32
    return %arg0, %c0_i32, %arg1 : i32, i32, i32
  }
  func.func @transform_2(%arg0: i32, %arg1: i32) -> (i32, i32, i32) {
    %c0_i32 = arith.constant 0 : i32
    %c0_i32_0 = arith.constant 0 : i32
    return %arg0, %c0_i32, %arg1 : i32, i32, i32
  }
}

</mosaic_0001>

<bundles_post_ra>
// kernel: tpu_custom_call.1
= control target key start
LH: loop header
LB: loop body
LE: loop exit
PB: predicated region body
PF: predicated region fallthrough
CT: control target
= control target key end

     0   :  { %7 = vsyncpa [#allocation3], 0  ;;  %s640_s0 = inlined_call_operand.vmem [shape: f32[16,8], index: 0, kind: input, shape index: {}]   ;;  %s641_s1 = inlined_call_operand.vmem [shape: f32[2,8,128], index: 1, kind: input, shape index: {}]   ;;  %s642_s2 = inlined_call_operand.hbm [shape: f32[2,16,128], index: 2, kind: output, shape index: {}]  }
   0x1   :  { %9 = vsyncpa [#allocation3 + $0x1], 0  ;;  %s519_s9 = smov 0   ;;  %s521_s10 = smov 0  }
   0x2   :  { %s523_s11 = smov 0   ;;  %s525_s12 = smov 0  }
   0x3   :  { %s527_s13 = smov 0   ;;  %s529_s14 = smov 0  }
   0x4 LB: > { %s341_s15 = sadd.s32 4294967295, %s499_s14   ;;  %s342_s16 = sadd.s32 4294967294, %s499_s14   ;;  %s499_s14 = sphi %s529_s14, %s15_s14   ;;  %s495_s13 = sphi %s527_s13, %s649_s13   ;;  %s491_s12 = sphi %s525_s12, %s648_s12   ;;  %s487_s11 = sphi %s523_s11, %s647_s11   ;;  %s483_s10 = sphi %s521_s10, %s646_s10   ;;  %s479_s9 = sphi %s519_s9, %s645_s9  }
   0x5   : > { %s27_s17 = sadd.s32 1, %s495_s13  ;;  %s85_s18 = sadd.s32 1, %s487_s11 }
   0x6   : > { %p29_p0 = scmp.ge.s32.totalorder %s27_s17, 2  ;;  %p95_p1 = scmp.ne.s32.totalorder %s487_s11, %s483_s10 }
   0x7   : > { %p96_p2 = scmp.eq.s32.totalorder %s341_s15, 1  ;;  %p101_p3 = scmp.ne.s32.totalorder %s483_s10, %s479_s9 }
   0x8   : > { %s651_s17 = smov (%p29_p0, %s27_s17), 0  ;;  %p102_p5 = scmp.eq.s32.totalorder %s342_s16, 1 }
   0x9   : > { %p559_p4 = por %p96_p2, %p95_p1  ;;  %s80_s20 = ssub.s32 %s495_s13, %s651_s17 }
   0xa   : > { %p345_p6 = scmp.ge.s32.totalorder %s499_s14, 1  ;;  %p83_p7 = scmp.eq.s32.totalorder %s80_s20, 0 }
   0xb   : > { %p566_p8 = por %p102_p5, %p101_p3  ;;  %p133_p9 = scmp.lt.s32.totalorder %s499_s14, 3 }
   0xc   : > { %s572_s22 = scalar_select %p83_p7, %s487_s11, %s85_s18  }
   0xd   : > { %p134_p10 = pnand %p345_p6, %p133_p9 }
   0xe   : > { %p157_p11 = scmp.lt.s32.totalorder (!%p134_p10), %s491_s12, 1  ;;  %v164_v0 = vld [vmem:[%s640_s0] sm:$0xff] (!%p134_p10)  ;;  %vm167_vm0 = vcmask (!%p134_p10), 64512   ;;  %v165_v2 = vld [vmem:[%s640_s0 + $0x8] sm:$0xff] (!%p134_p10)  ;;  %s154_s4 = sand.u32 (!%p134_p10), 1, %s483_s10  }
   0xf   : > { %137 = sbr.rel (%p134_p10) target bundleno = 257 (0x101), region = 28  ;;  %361 = vmatprep.mubr.msk.f32.mxu0 (!%p134_p10), %vm167_vm0, %v164_v0  ;;  %s346_s5 = sshll.u32 (!%p134_p10), %s154_s4, 4 }
  0x10   : > { %s156_s6 = scalar_lea.vmem (!%p134_p10), [#allocation2], %s346_s5  ;;  %s355_s8 = sshll.u32 (!%p134_p10), %s491_s12, 8 }
  0x11   : > { %s266_s7 = sshll.u32 (!%p134_p10), %s156_s6, 4  ;;  %s592_s18 = scalar_lea.hbm (!%p134_p10), %s642_s2, %s355_s8  ;;  %s587_s7 = int_to_ptr.vmem [resolvable:$true] %s266_s7 }
  0x12   : > { %s594_s20 = scalar_lea.sflag (!%p134_p10), [#allocation3], %s154_s4  ;;  %s421_s23 = scalar_lea.vmem (!%p134_p10), %s587_s7, 256 }
  0x13   : > { %p422_p12 = scmp.ne.s32.totalorder (!%p134_p10), %s587_s7, %s421_s23 }
  0x15   : > { %p423_p13 = pnand (!%p134_p10), %p422_p12, %p559_p4 }
  0x16   : > { %s158_s25 = scalar_select %p157_p11, %s491_s12, 1 }
  0x17   : > { %p424_p0 = pneg %p423_p13  ;;  %s501_s12 = smov [#allocation2]  }
  0x18   : > { %s347_s26 = sshll.u32 %s158_s25, 3  ;;  %s425_s24 = sshll.u32 %s501_s12, 4  ;;  %s426_s24 = int_to_ptr.vmem [resolvable:$false] %s425_s24 }
  0x19   : > { %s163_s29 = scalar_lea.vmem %s641_s1, %s347_s26  ;;  %s427_s25 = scalar_lea.vmem %s426_s24, 512 }
  0x1a   : > { %v166_v1 = vld [vmem:[%s163_s29] sm:$0xff]  ;;  %p428_p1 = scmp.lt.s32.totalorder %s587_s7, %s426_s24  ;;  %p429_p2 = scmp.lt.s32.totalorder %s427_s25, %s421_s23 }
  0x1b   : > { %359 = vmatprep.subr.mxu0 %v166_v1 }
  0x1c   : > { %360 = vmatpush3.msra.mxu0 %v166_v1  ;;  %p430_p3 = por %p429_p2, %p428_p1 }
  0x1d   : > { %362 = vmatmul.mubr.msk.f32.vlgmr.msra.gmra.mrb[0].mxu0 %vm167_vm0, %v165_v2 }
  0x1e   : > { %p431_p5 = pnand %p430_p3, %p424_p0 }
  0xf0   : > { %v363_v3 = vpop.f32.mrb[0].mxu0 }
  0xf1   : > { %250 = vst [vmem:[%s156_s6 + $0x8] sm:$0xff] %v363_v3  ;;  %v240_v4 = vpop.f32.mrb[1].mxu0 }
  0xf2   : > { %249 = vst [vmem:[%s156_s6] sm:$0xff] %v240_v4 }
  0xf3   : > { %434 = shalt.err (!%p431_p5)
}
  0xf4   : > { %s435_s26 = scalar_lea.hbm %s592_s18, 256  ;;  %s439_s29 = scalar_lea.hbm %s642_s2, 512 }
  0xf5   : > { %p436_p6 = scmp.ne.s32.totalorder %s592_s18, %s435_s26  ;;  %p440_p10 = scmp.lt.u32.totalorder %s592_s18, %s642_s2 }
  0xf6   : > { %p441_p11 = scmp.lt.u32.totalorder %s439_s29, %s435_s26  ;;  %p443_p13 = scmp.lt.u32.totalorder %s435_s26, %s592_s18 }
  0xf7   : > { %p437_p7 = pnand %p436_p6, %p559_p4 }
  0xf8   : > { %p442_p12 = por %p441_p11, %p440_p10 }
  0xf9   : > { %p438_p9 = pneg %p437_p7 }
  0xfa   : > { %p444_p0 = por %p443_p13, %p442_p12 }
  0xfc   : > { %p445_p1 = pnand %p444_p0, %p438_p9 }
  0xfe   : > { %448 = shalt.err (!%p445_p1)
}
  0xff   : > { %s502_s4 = smov 128   ;;  %s503_s5 = smov 8  }
 0x100   : > { %364 = dma.vmem_to_hbm [thread:$0]  (%p559_p4), %s587_s7, 256, %s592_s18, %s594_s20, %s502_s4, %s502_s4, %s503_s5  }
 0x101 PF: > { %p370_p2 = scmp.ge.s32.totalorder %s499_s14, 2  ;;  %s281_s6 = sand.u32 1, %s479_s9  }
 0x102   : > { %s282_s8 = scalar_lea.sflag [#allocation3], %s281_s6 }
 0x103   : > { %p367_p3 = pnand %p370_p2, %p566_p8 }
 0x105   : > { %474 = dma.done.wait (!%p367_p3), %s282_s8, 256  }
 0x106   : > { %476 = vsyncadd (!%p367_p3), %s282_s8, 4294967040  ;;  %s15_s14 = sadd.s32 1, %s499_s14   ;;  %s645_s9 = smov %s483_s10 }
 0x107   : > { %p12_p5 = scmp.ge.s32.totalorder %s15_s14, 4   ;;  %s646_s10 = smov %s487_s11 }
 0x108   : > { %s647_s11 = smov %s572_s22  ;;  %s648_s12 = smov %s495_s13 }
 0x109   : > { %s649_s13 = smov %s651_s17  ;;  %14 = sbr.rel (!%p12_p5) target bundleno = 4 (0x4), region = 63 }
 0x110   :  { %287 = vsyncpa [#allocation3], 1 }
 0x111   :  { %289 = vsyncpa [#allocation3 + $0x1], 1 }

</bundles_post_ra>
